<compile_context>
chip_gen: v5e
topology: v5e:2x2
jax: 0.10.0
libtpu: 0.0.40
codegen_flags: <defaults>
</compile_context>

<pallas_src>
import functools

import jax
import jax.numpy as jnp
from jax import lax
from jax.experimental import pallas as pl
from jax.experimental.pallas import tpu as pltpu

HIDDEN = 32            # hidden width of the V_nn MLP
CHUNK = 512            # lanes processed per inner-loop iteration (mult. of 256/128)
MAX_BATCH_TILE = 4096  # max lanes per grid step (multiple of CHUNK)


def _round_up(x, m):
    return -(-x // m) * m


def _choose_batch_tile(n, max_tile, chunk):
    """Pick the lane-axis block size.

    Multiple of 128 (and of `chunk` when larger than one chunk), capped at
    `max_tile`, and small enough that the "parallel" grid has >= 2 steps
    whenever n allows it (keeps both v7x TensorCores fed).
    """
    if n <= chunk:
        return max(128, _round_up(n, 128))
    target = _round_up((n + 1) // 2, chunk)
    return max(chunk, min(max_tile, target))


def _pinn_mlp_kernel(s_ref, t_ref, wpack_ref, w2t_ref, o_ref, *,
                     hidden, chunk, n_chunks, use_bf16_mxu, mxu_precision):
    """One lane-dense batch block of V_nn, walked in `chunk`-lane pieces.

    Shapes inside the kernel (TILE = n_chunks * chunk, H = hidden):
      s_ref, t_ref : (1, TILE)   S and tau rows
      wpack_ref    : (H, 8)      packed params [w1_S, w1_tau, b1, b2, w3, b3, 0, 0]
      w2t_ref      : (H, H)      layer-2 weights, transposed (W2^T)
      o_ref        : (1, TILE)   V row (lane-dense output)
    """
    wp = wpack_ref[...]                                    # (H, 8) resident
    # Hoisted lane-broadcasts of the tiny per-row params (JAX does not CSE
    # broadcast_in_dim, so these must live OUTSIDE the chunk loop).
    w1s = jnp.broadcast_to(wp[:, 0:1], (hidden, chunk))
    w1t = jnp.broadcast_to(wp[:, 1:2], (hidden, chunk))
    b1 = jnp.broadcast_to(wp[:, 2:3], (hidden, chunk))
    b2 = jnp.broadcast_to(wp[:, 3:4], (hidden, chunk))
    w3 = jnp.broadcast_to(wp[:, 4:5], (hidden, chunk))
    b3 = wp[0:1, 5:6]                                      # (1, 1)
    w2t = w2t_ref[...]                                     # (H, H) resident
    if use_bf16_mxu:
        w2t = w2t.astype(jnp.bfloat16)

    def body(c, carry):
        off = pl.multiple_of(c * chunk, 128)
        s = s_ref[:, pl.ds(off, chunk)]                    # (1, chunk)
        t = t_ref[:, pl.ds(off, chunk)]                    # (1, chunk)

        # Layer 1 (K = 2): two broadcast FMAs on the VPU (no MXU push for a
        # degenerate contraction).
        h1 = jnp.tanh(w1s * s + w1t * t + b1)              # (H, chunk)

        # Layer 2 (H x H): the only real matmul -> MXU.
        if use_bf16_mxu:
            z2 = jnp.dot(w2t, h1.astype(jnp.bfloat16),
                         preferred_element_type=jnp.float32)
        else:
            z2 = jnp.dot(w2t, h1, preferred_element_type=jnp.float32,
                         precision=mxu_precision)
        h2 = jnp.tanh(z2 + b2)                             # (H, chunk)

        # Layer 3 (output width 1): VPU multiply + sublane (XLU) reduce.
        v = jnp.sum(w3 * h2, axis=0, keepdims=True) + b3   # (1, chunk)
        o_ref[:, pl.ds(off, chunk)] = v.astype(o_ref.dtype)
        return carry

    lax.fori_loop(0, n_chunks, body, 0, unroll=True)


@functools.partial(jax.jit, static_argnames=("max_batch_tile", "chunk",
                                              "use_bf16_mxu", "mxu_precision"))
def european_pinn_forward(S, tau, params, *, max_batch_tile=MAX_BATCH_TILE,
                          chunk=CHUNK, use_bf16_mxu=False, mxu_precision=None):
    """Pallas implementation of EuropeanPINN.forward(S, tau).

    S, tau: (N, 1) float arrays.  Returns V of shape (N, 1).
    """
    w1, b1, w2, b2, w3, b3 = params          # (2,H), (1,H), (H,H), (1,H), (H,1), (1,1)
    h = w1.shape[1]

    # One-time layout plumbing: pack every tiny per-row parameter into one
    # resident (H, 8) tile: cols = [w1_S, w1_tau, b1, b2, w3, b3, 0, 0].
    wpack = jnp.zeros((h, 8), jnp.float32)
    wpack = wpack.at[:, 0].set(w1[0].astype(jnp.float32))
    wpack = wpack.at[:, 1].set(w1[1].astype(jnp.float32))
    wpack = wpack.at[:, 2].set(b1.reshape(h).astype(jnp.float32))
    wpack = wpack.at[:, 3].set(b2.reshape(h).astype(jnp.float32))
    wpack = wpack.at[:, 4].set(w3.reshape(h).astype(jnp.float32))
    wpack = wpack.at[:, 5].set(b3.reshape(()).astype(jnp.float32))
    w2t = w2.T.astype(jnp.float32)                         # (H, H)  W2^T

    n = S.shape[0]
    batch_tile = _choose_batch_tile(n, max_batch_tile, chunk)
    chunk_eff = min(chunk, batch_tile)
    n_chunks = batch_tile // chunk_eff
    n_tiles = pl.cdiv(n, batch_tile)

    # Batch lives on the lane axis; (N,1) -> (1,N) is a free reshape and there
    # is NO wrapper padding: Pallas pads OOB reads / drops OOB writes on the
    # (possibly partial) last block.
    s_row = S.astype(jnp.float32).reshape(1, n)
    t_row = tau.astype(jnp.float32).reshape(1, n)

    kernel = functools.partial(
        _pinn_mlp_kernel, hidden=h, chunk=chunk_eff, n_chunks=n_chunks,
        use_bf16_mxu=use_bf16_mxu, mxu_precision=mxu_precision)

    v_row = pl.pallas_call(
        kernel,
        out_shape=jax.ShapeDtypeStruct((1, n), jnp.float32),
        grid_spec=pltpu.PrefetchScalarGridSpec(
            num_scalar_prefetch=0,
            grid=(n_tiles,),
            in_specs=[
                pl.BlockSpec((1, batch_tile), lambda i: (0, i)),  # S row block
                pl.BlockSpec((1, batch_tile), lambda i: (0, i)),  # tau row block
                pl.BlockSpec((h, 8), lambda i: (0, 0)),           # packed params
                pl.BlockSpec((h, h), lambda i: (0, 0)),           # W2^T (resident)
            ],
            out_specs=pl.BlockSpec((1, batch_tile), lambda i: (0, i)),
        ),
        compiler_params=pltpu.CompilerParams(
            dimension_semantics=("parallel",),
            # Explicit VMEM budget: at the largest tile this kernel needs
            # well under 2 MiB, so 32 MiB is safe on every generation
            # including v7x's smaller per-TC VMEM.
            vmem_limit_bytes=32 * 1024 * 1024),
    )(s_row, t_row, wpack, w2t)

    return v_row.reshape(n, 1)


def init_params(key, hidden=HIDDEN):
    """Deterministic synthetic V_nn parameters (2 -> hidden -> hidden -> 1)."""
    k1, k2, k3 = jax.random.split(key, 3)
    w1 = jax.random.normal(k1, (2, hidden), jnp.float32) * 0.5
    b1 = jnp.zeros((1, hidden), jnp.float32)
    w2 = jax.random.normal(k2, (hidden, hidden), jnp.float32) * (1.0 / hidden**0.5)
    b2 = jnp.zeros((1, hidden), jnp.float32)
    w3 = jax.random.normal(k3, (hidden, 1), jnp.float32) * (1.0 / hidden**0.5)
    b3 = jnp.zeros((1, 1), jnp.float32)
    return (w1, b1, w2, b2, w3, b3)


def _reference_forward(S, tau, params):
    """Pure-JAX reference (mirrors the PyTorch forward)."""
    w1, b1, w2, b2, w3, b3 = params
    x = jnp.concatenate([S, tau], axis=1)
    h1 = jnp.tanh(x @ w1 + b1)
    h2 = jnp.tanh(h1 @ w2 + b2)
    return h2 @ w3 + b3


def _check(N, params, ks, kt, name):
    S = jax.random.uniform(ks, (N, 1), jnp.float32, 0.0, 200.0)
    tau = jax.random.uniform(kt, (N, 1), jnp.float32, 0.0, 1.0)
    V = jax.block_until_ready(european_pinn_forward(S, tau, params))
    V_ref = _reference_forward(S, tau, params)
    assert V.shape == (N, 1)
    assert jnp.allclose(V, V_ref, atol=1e-4, rtol=1e-4), f"mismatch vs reference ({name})"


if __name__ == "__main__":
    key = jax.random.PRNGKey(0)
    kp, ks, kt = jax.random.split(key, 3)

    params = init_params(kp)

    # Small demo batch (single partial block, block wider than the array).
    _check(64, params, ks, kt, "small N")

    # Non-multiple-of-tile, 2 parallel grid tiles (keeps both v7x TCs fed;
    # exercises the OOB-read-pad / OOB-write-drop path with no wrapper pad).
    _check(1000, params, ks, kt, "multi-tile")

    # Multi-chunk inner loop (n_chunks > 1) plus a partial trailing block.
    _check(5000, params, ks, kt, "multi-chunk")

    print("KERNEL_OK")
</pallas_src>

<mosaic_0001>
module attributes {stable_mosaic.version = 11 : i64} {
  func.func @_pinn_mlp_kernel(%arg0: i32, %arg1: memref<1x128xf32, #tpu.memory_space<vmem>>, %arg2: memref<1x128xf32, #tpu.memory_space<vmem>>, %arg3: memref<32x8xf32, #tpu.memory_space<vmem>>, %arg4: memref<32x32xf32, #tpu.memory_space<vmem>>, %arg5: memref<1x128xf32, #tpu.memory_space<vmem>>) attributes {dimension_semantics = [#tpu.dimension_semantics<parallel>], iteration_bounds = array<i64: 1>, scalar_prefetch = 0 : i64, scratch_operands = 0 : i64, tpu.core_type = #tpu.core_type<tc>, window_params = [{transform_indices = @transform_0, window_bounds = array<i64: 1, 128>}, {transform_indices = @transform_1, window_bounds = array<i64: 1, 128>}, {pipeline_mode = #tpu.pipeline_mode<synchronous>, transform_indices = @transform_2, window_bounds = array<i64: 32, 8>}, {pipeline_mode = #tpu.pipeline_mode<synchronous>, transform_indices = @transform_3, window_bounds = array<i64: 32, 32>}, {transform_indices = @transform_4, window_bounds = array<i64: 1, 128>}]} {
    %c0 = arith.constant 0 : index
    %c0_0 = arith.constant 0 : index
    %0 = vector.load %arg3[%c0, %c0_0] : memref<32x8xf32, #tpu.memory_space<vmem>>, vector<32x8xf32>
    %1 = vector.extract_strided_slice %0 {offsets = [0, 0], sizes = [32, 1], strides = [1, 1]} : vector<32x8xf32> to vector<32x1xf32>
    %2 = vector.shape_cast %1 : vector<32x1xf32> to vector<32x1xf32>
    %3 = vector.broadcast %2 : vector<32x1xf32> to vector<32x128xf32>
    %4 = vector.extract_strided_slice %0 {offsets = [0, 1], sizes = [32, 1], strides = [1, 1]} : vector<32x8xf32> to vector<32x1xf32>
    %5 = vector.shape_cast %4 : vector<32x1xf32> to vector<32x1xf32>
    %6 = vector.broadcast %5 : vector<32x1xf32> to vector<32x128xf32>
    %7 = vector.extract_strided_slice %0 {offsets = [0, 2], sizes = [32, 1], strides = [1, 1]} : vector<32x8xf32> to vector<32x1xf32>
    %8 = vector.shape_cast %7 : vector<32x1xf32> to vector<32x1xf32>
    %9 = vector.broadcast %8 : vector<32x1xf32> to vector<32x128xf32>
    %10 = vector.extract_strided_slice %0 {offsets = [0, 3], sizes = [32, 1], strides = [1, 1]} : vector<32x8xf32> to vector<32x1xf32>
    %11 = vector.shape_cast %10 : vector<32x1xf32> to vector<32x1xf32>
    %12 = vector.broadcast %11 : vector<32x1xf32> to vector<32x128xf32>
    %13 = vector.extract_strided_slice %0 {offsets = [0, 4], sizes = [32, 1], strides = [1, 1]} : vector<32x8xf32> to vector<32x1xf32>
    %14 = vector.shape_cast %13 : vector<32x1xf32> to vector<32x1xf32>
    %15 = vector.broadcast %14 : vector<32x1xf32> to vector<32x128xf32>
    %16 = vector.extract_strided_slice %0 {offsets = [0, 5], sizes = [1, 1], strides = [1, 1]} : vector<32x8xf32> to vector<1x1xf32>
    %c0_1 = arith.constant 0 : index
    %c0_2 = arith.constant 0 : index
    %17 = vector.load %arg4[%c0_1, %c0_2] : memref<32x32xf32, #tpu.memory_space<vmem>>, vector<32x32xf32>
    %c0_i32 = arith.constant 0 : i32
    %c128_i32 = arith.constant 128 : i32
    %18 = arith.muli %c0_i32, %c128_i32 : i32
    %19 = tpu.assume_multiple %18, 128 : i32
    %c0_3 = arith.constant 0 : index
    %20 = arith.index_cast %19 : i32 to index
    %21 = vector.load %arg1[%c0_3, %20] : memref<1x128xf32, #tpu.memory_space<vmem>>, vector<1x128xf32>
    %c0_4 = arith.constant 0 : index
    %22 = arith.index_cast %19 : i32 to index
    %23 = vector.load %arg2[%c0_4, %22] : memref<1x128xf32, #tpu.memory_space<vmem>>, vector<1x128xf32>
    %24 = vector.broadcast %21 : vector<1x128xf32> to vector<32x128xf32>
    %25 = arith.mulf %3, %24 : vector<32x128xf32>
    %26 = vector.broadcast %23 : vector<1x128xf32> to vector<32x128xf32>
    %27 = arith.mulf %6, %26 : vector<32x128xf32>
    %28 = arith.addf %25, %27 : vector<32x128xf32>
    %29 = arith.addf %28, %9 : vector<32x128xf32>
    %30 = math.tanh %29 : vector<32x128xf32>
    %cst = arith.constant dense<0.000000e+00> : vector<32x128xf32>
    %31 = tpu.matmul %17, %30, %cst {dimension_numbers = #tpu.dot_dimension_numbers<[1], [0], [0], [1], [0, 0, 1, 1], [], []>} : vector<32x32xf32>, vector<32x128xf32>, vector<32x128xf32> -> vector<32x128xf32>
    %32 = arith.addf %31, %12 : vector<32x128xf32>
    %33 = math.tanh %32 : vector<32x128xf32>
    %34 = arith.mulf %15, %33 : vector<32x128xf32>
    %cst_5 = arith.constant dense<0.000000e+00> : vector<128xf32>
    %35 = vector.multi_reduction <add>, %34, %cst_5 [0] : vector<32x128xf32> to vector<128xf32>
    %36 = vector.shape_cast %35 : vector<128xf32> to vector<1x128xf32>
    %37 = vector.broadcast %16 : vector<1x1xf32> to vector<1x128xf32>
    %38 = arith.addf %36, %37 : vector<1x128xf32>
    %c0_6 = arith.constant 0 : index
    %39 = arith.index_cast %19 : i32 to index
    %40 = vector.load %arg5[%c0_6, %39] : memref<1x128xf32, #tpu.memory_space<vmem>>, vector<1x128xf32>
    tpu.vector_store %arg5[%c0_6, %39], %38 {strides = array<i32>} : memref<1x128xf32, #tpu.memory_space<vmem>>, vector<1x128xf32>,
    %c1_i32 = arith.constant 1 : i32
    return
  }
  func.func @transform_0(%arg0: i32) -> (i32, i32) {
    %c0_i32 = arith.constant 0 : i32
    %c0_i32_0 = arith.constant 0 : i32
    return %c0_i32, %arg0 : i32, i32
  }
  func.func @transform_1(%arg0: i32) -> (i32, i32) {
    %c0_i32 = arith.constant 0 : i32
    %c0_i32_0 = arith.constant 0 : i32
    return %c0_i32, %arg0 : i32, i32
  }
  func.func @transform_2(%arg0: i32) -> (i32, i32) {
    %c0_i32 = arith.constant 0 : i32
    %c0_i32_0 = arith.constant 0 : i32
    %c0_i32_1 = arith.constant 0 : i32
    return %c0_i32, %c0_i32_0 : i32, i32
  }
  func.func @transform_3(%arg0: i32) -> (i32, i32) {
    %c0_i32 = arith.constant 0 : i32
    %c0_i32_0 = arith.constant 0 : i32
    %c0_i32_1 = arith.constant 0 : i32
    return %c0_i32, %c0_i32_0 : i32, i32
  }
  func.func @transform_4(%arg0: i32) -> (i32, i32) {
    %c0_i32 = arith.constant 0 : i32
    %c0_i32_0 = arith.constant 0 : i32
    return %c0_i32, %arg0 : i32, i32
  }
}

</mosaic_0001>

<bundles_post_ra>
// kernel: european_pinn_forward.1
= control target key start
LH: loop header
LB: loop body
LE: loop exit
PB: predicated region body
PF: predicated region fallthrough
CT: control target
= control target key end

     0   :  { %v303_v2 = vmov 0   ;;  %s375_s0 = inlined_call_operand.vmem [shape: f32[1,64], index: 0, kind: input, shape index: {}]   ;;  %s376_s1 = inlined_call_operand.vmem [shape: f32[1,64], index: 1, kind: input, shape index: {}]   ;;  %s377_s2 = inlined_call_operand.vmem [shape: f32[32,8], index: 2, kind: input, shape index: {}]   ;;  %s378_s3 = inlined_call_operand.vmem [shape: f32[32,32], index: 3, kind: input, shape index: {}]   ;;  %s379_s4 = inlined_call_operand.hbm [shape: f32[1,64], index: 4, kind: output, shape index: {}]  }
   0x1   :  { %v338_v0 = vld [vmem:[%s377_s2 + $0x18] sm:$0xff]  ;;  %v20_v1 = vld [vmem:[%s377_s2 + $0x10] sm:$0xff]  ;;  %244 = vset.pattern.permute.xlu1 %v303_v2  ;;  %242 = vset.pattern.permute.xlu0 %v303_v2  ;;  %v19_v3 = vld [vmem:[%s377_s2 + $0x8] sm:$0xff] }
   0x2   :  { %39 = vperm.xlu0 %242, %v338_v0   ;;  %34 = vperm.xlu1 %244, %v20_v1  }
   0x3   :  { %9 = vsyncpa [#allocation3], 0  ;;  %246 = vset.pattern.permute.xlu2 %v303_v2  ;;  %v304_v4 = vmov 1   ;;  %v18_v5 = vld [vmem:[%s377_s2] sm:$0xff]  ;;  %v305_v6 = vmov 2   ;;  %v306_v8 = vmov 3  }
   0x4   :  { %29 = vperm.xlu2 %246, %v19_v3   ;;  %v260_v14 = vld [vmem:[%s376_s1] ss:$0 sm:$0xff]  ;;  %v307_v15 = vmov 4   ;;  %v308_v27 = vmov 5   ;;  %vm138_vm0 = vcmask 261120   ;;  %v107_v45 = vld [vmem:[%s378_s3 + $0x8] sm:$0xff] }
   0x5   :  { %v259_v16 = vld [vmem:[%s375_s0] ss:$0 sm:$0xff]  ;;  %v108_v46 = vld [vmem:[%s378_s3 + $0x10] sm:$0xff]  ;;  %v109_v47 = vld [vmem:[%s378_s3 + $0x18] sm:$0xff]  ;;  %s210_s9 = sshll.u32 %s379_s4, 4  ;;  %s211_s9 = int_to_ptr.hbm [resolvable:$true] %s210_s9 }
   0x6   :  { %v106_v44 = vld [vmem:[%s378_s3] sm:$0xff]  ;;  %s309_s3 = smov [#allocation2]  }
   0x7   :  { %s208_s6 = sshll.u32 %s309_s3, 4  ;;  %s209_s6 = int_to_ptr.vmem [resolvable:$true] %s208_s6 }
   0xa   :  { %243 = vset.pattern.permute.xlu0 %v304_v4  ;;  %245 = vset.pattern.permute.xlu1 %v304_v4 }
   0xb   :  { %55 = vperm.xlu0 %243, %v338_v0   ;;  %51 = vperm.xlu1 %245, %v20_v1  }
   0xc   :  { %247 = vset.pattern.permute.xlu2 %v304_v4 }
   0xd   :  { %47 = vperm.xlu2 %247, %v19_v3  }
  0x13   :  { %248 = vset.pattern.permute.xlu1 %v305_v6  ;;  %43 = vperm.xlu0 %243, %v18_v5  }
  0x14   :  { %71 = vperm.xlu1 %248, %v338_v0  }
  0x15   :  { %249 = vset.pattern.permute.xlu2 %v303_v2 }
  0x16   :  { %24 = vperm.xlu2 %249, %v18_v5  }
  0x1b   :  { %251 = vset.pattern.permute.xlu0 %v305_v6 }
  0x1c   :  { %67 = vperm.xlu1 %248, %v20_v1   ;;  %59 = vperm.xlu0 %251, %v18_v5  }
  0x1e   :  { %250 = vset.pattern.permute.xlu2 %v305_v6 }
  0x1f   :  { %63 = vperm.xlu2 %250, %v19_v3  }
  0x24   :  { %252 = vset.pattern.permute.xlu1 %v306_v8  ;;  %254 = vset.pattern.permute.xlu0 %v307_v15 }
  0x25   :  { %75 = vperm.xlu1 %252, %v18_v5   ;;  %91 = vperm.xlu0 %254, %v18_v5  }
  0x27   :  { %253 = vset.pattern.permute.xlu2 %v306_v8 }
  0x28   :  { %79 = vperm.xlu2 %253, %v19_v3  }
  0x2d   :  { %83 = vperm.xlu1 %252, %v20_v1   ;;  %258 = vset.pattern.permute.xlu0 %v308_v27 }
  0x30   :  { %87 = vperm.xlu2 %253, %v338_v0  }
  0x35   :  { %255 = vset.pattern.permute.xlu1 %v307_v15 }
  0x36   :  { %95 = vperm.xlu1 %255, %v19_v3  }
  0x38   :  { %256 = vset.pattern.permute.xlu2 %v307_v15 }
  0x39   :  { %99 = vperm.xlu2 %256, %v20_v1  }
  0x3e   :  { %103 = vperm.xlu1 %255, %v338_v0  }
  0x41   :  { %257 = vset.pattern.permute.xlu2 %v308_v27 }
  0x42   :  { %198 = vperm.xlu2 %257, %v18_v5  }
  0x5e   :  { %v30_v7 = vpop.permute.xlu2 %29 }
  0x5f   :  { %v116_v23 = vmul.f32 %v259_v16, %v30_v7 }
  0x67   :  { %v48_v11 = vpop.permute.xlu2 %47 }
  0x68   :  { %v123_v24 = vmul.f32 %v260_v14, %v48_v11 }
  0x6a   :  { %v127_v30 = vadd.f32 %v123_v24, %v116_v23 }
  0x70   :  { %v25_v18 = vpop.permute.xlu2 %24 }
  0x71   :  { %v115_v28 = vmul.f32 %v259_v16, %v25_v18 }
  0x74   :  { %v35_v9 = vpop.permute.xlu1 %34  ;;  %v40_v10 = vpop.permute.xlu0 %39 }
  0x75   :  { %v118_v19 = vmul.f32 %v259_v16, %v40_v10  ;;  %v117_v29 = vmul.f32 %v259_v16, %v35_v9 }
  0x79   :  { %v64_v32 = vpop.permute.xlu2 %63 }
  0x7a   :  { %v131_v37 = vadd.f32 %v127_v30, %v64_v32 }
  0x7d   :  { %v56_v12 = vpop.permute.xlu0 %55  ;;  %v52_v13 = vpop.permute.xlu1 %51 }
  0x7e   :  { %v125_v17 = vmul.f32 %v260_v14, %v56_v12  ;;  %v124_v26 = vmul.f32 %v260_v14, %v52_v13 }
  0x80   :  { %v129_v21 = vadd.f32 %v125_v17, %v118_v19  ;;  %v128_v33 = vadd.f32 %v124_v26, %v117_v29 }
  0x82   :  { %v80_v49 = vpop.permute.xlu2 %79 }
  0x85   :  { %v44_v20 = vpop.permute.xlu0 %43 }
  0x86   :  { %v72_v22 = vpop.permute.xlu1 %71  ;;  %v122_v31 = vmul.f32 %v260_v14, %v44_v20 }
  0x87   :  { %v133_v25 = vadd.f32 %v129_v21, %v72_v22 }
  0x88   :  { %v126_v39 = vadd.f32 %v122_v31, %v115_v28 }
  0x89   :  { %261 = vtanh.f32 %v133_v25 }
  0x8a   :  { %v88_v55 = vpop.permute.xlu2 %87 }
  0x8e   :  { %v68_v34 = vpop.permute.xlu1 %67  ;;  %v60_v35 = vpop.permute.xlu0 %59 }
  0x8f   :  { %v262_v36 = vpop.eup %261  ;;  %v132_v38 = vadd.f32 %v128_v33, %v68_v34  ;;  %v130_v40 = vadd.f32 %v126_v39, %v60_v35 }
  0x90   :  { %163 = vmatpush.msra.mxu0 %v262_v36  ;;  %223 = vmatpush.msra.mxu1 %v262_v36 }
  0x91   :  { %263 = vtanh.f32 %v132_v38  ;;  %224 = vmatpush.msra.mxu2 %v262_v36  ;;  %225 = vmatpush.msra.mxu3 %v262_v36 }
  0x92   :  { %265 = vtanh.f32 %v131_v37 }
  0x93   :  { %267 = vtanh.f32 %v130_v40  ;;  %v100_v2 = vpop.permute.xlu2 %99 }
  0x97   :  { %v264_v41 = vpop.eup %263  ;;  %v76_v48 = vpop.permute.xlu1 %75 }
  0x98   :  { %164 = vmatpush.msra.mxu0 %v264_v41  ;;  %226 = vmatpush.msra.mxu1 %v264_v41  ;;  %v266_v42 = vpop.eup %265  ;;  %v92_v63 = vpop.permute.xlu0 %91 }
  0x99   :  { %227 = vmatpush.msra.mxu2 %v264_v41  ;;  %228 = vmatpush.msra.mxu3 %v264_v41  ;;  %v268_v43 = vpop.eup %267 }
  0x9a   :  { %165 = vmatpush.msra.mxu0 %v266_v42  ;;  %229 = vmatpush.msra.mxu1 %v266_v42 }
  0x9b   :  { %230 = vmatpush.msra.mxu2 %v266_v42  ;;  %231 = vmatpush.msra.mxu3 %v266_v42 }
  0x9c   :  { %166 = vmatpush.msra.mxu0 %v268_v43  ;;  %232 = vmatpush.msra.mxu1 %v268_v43  ;;  %v199_v16 = vpop.permute.xlu2 %198 }
  0x9d   :  { %233 = vmatpush.msra.mxu2 %v268_v43  ;;  %234 = vmatpush.msra.mxu3 %v268_v43 }
  0x9e   :  { %219 = vmatmul.msk.f32.vlgmr.msra.gmra.mxu0 %vm138_vm0, %v106_v44  ;;  %220 = vmatmul.msk.f32.vlgmr.msra.gmra.mxu1 %vm138_vm0, %v107_v45 }
  0x9f   :  { %221 = vmatmul.msk.f32.vlgmr.msra.gmra.mxu2 %vm138_vm0, %v108_v46  ;;  %222 = vmatmul.msk.f32.vlgmr.msra.gmra.mxu3 %vm138_vm0, %v109_v47  ;;  %v84_v50 = vpop.permute.xlu1 %83 }
  0xa8   :  { %v96_v58 = vpop.permute.xlu1 %95 }
  0xb0   :  { %v104_v7 = vpop.permute.xlu1 %103 }
 0x11b   :  { %v168_v51 = vpop.f32.mrf.mxu0  ;;  %v171_v52 = vpop.f32.mrf.mxu1 }
 0x11c   :  { %v169_v53 = vadd.f32 %v168_v51, %v76_v48  ;;  %v172_v54 = vadd.f32 %v171_v52, %v80_v49 }
 0x11e   :  { %269 = vtanh.f32 %v169_v53 }
 0x11f   :  { %271 = vtanh.f32 %v172_v54 }
 0x122   :  { %v174_v56 = vpop.f32.mrf.mxu2  ;;  %v177_v57 = vpop.f32.mrf.mxu3 }
 0x123   :  { %v175_v59 = vadd.f32 %v174_v56, %v84_v50  ;;  %v178_v60 = vadd.f32 %v177_v57, %v88_v55 }
 0x124   :  { %v270_v61 = vpop.eup %269 }
 0x125   :  { %v272_v62 = vpop.eup %271  ;;  %273 = vtanh.f32 %v175_v59  ;;  %v184_v1 = vmul.f32 %v270_v61, %v92_v63 }
 0x126   :  { %275 = vtanh.f32 %v178_v60  ;;  %v185_v0 = vmul.f32 %v272_v62, %v96_v58 }
 0x128   :  { %v188_v5 = vadd.f32 %v185_v0, %v184_v1 }
 0x12b   :  { %v274_v3 = vpop.eup %273 }
 0x12c   :  { %v276_v4 = vpop.eup %275  ;;  %v186_v6 = vmul.f32 %v274_v3, %v100_v2 }
 0x12d   :  { %v187_v8 = vmul.f32 %v276_v4, %v104_v7 }
 0x12e   :  { %v189_v9 = vadd.f32 %v188_v5, %v186_v6 }
 0x130   :  { %v190_v10 = vadd.f32 %v189_v9, %v187_v8 }
 0x132   :  { %v191_v11 = vrot.slane %v190_v10, 4 }
 0x134   :  { %v192_v12 = vadd.f32 %v191_v11, %v190_v10 }
 0x136   :  { %v193_v13 = vrot.slane %v192_v12, 2 }
 0x138   :  { %v194_v14 = vadd.f32 %v193_v13, %v192_v12 }
 0x13a   :  { %v195_v15 = vrot.slane %v194_v14, 1 }
 0x13c   :  { %v196_v17 = vadd.f32 %v195_v15, %v194_v14 }
 0x13e   :  { %v201_v18 = vadd.f32 %v199_v16, %v196_v17 }
 0x140   :  { %202 = vst [vmem:[#allocation2] sm:$0x1] %v201_v18 }
 0x141   :  { %213 = dma.vmem_to_hbm [thread:$0]  %s209_s6, 16, %s211_s9, [#allocation3]  }
 0x142   :  { %301 = dma.done.wait [#allocation3], 16  }
 0x143   :  { %302 = vsyncadd [#allocation3], 4294967280 }
 0x144   :  { %218 = vsyncpa [#allocation3], 1 }

</bundles_post_ra>
